<compile_context>
chip_gen: v7x
topology: tpu7x:2x2x1
jax: 0.10.0
libtpu: 0.0.40
codegen_flags: <defaults>
</compile_context>

<pallas_src>
import functools

import jax
import jax.numpy as jnp
from jax import lax
from jax.experimental import pallas as pl
from jax.experimental.pallas import tpu as pltpu

C_PAD = 128                 # padded class axis (lane dim of the output slab)
N_BLOCKS = 3                # tp / support / predicted-count row blocks
ROWS = N_BLOCKS * C_PAD     # 384 sublanes in the counts slab
NUM_CORES = 2               # leading "parallel" grid axis (v7x megacore split)
TILE_MAX = 2048             # samples per grid step (multiple of 256)


def _round_up(x, m):
    return ((x + m - 1) // m) * m


def _counts_kernel(pred_ref, true_ref, out_ref):
    """Accumulate per-class confusion counts for one tile of samples."""

    @pl.when(pl.program_id(1) == 0)
    def _init():
        out_ref[...] = jnp.zeros_like(out_ref)

    pred = pred_ref[...]                     # (1, TILE) int32, samples on lanes
    true = true_ref[...]                     # (1, TILE) int32
    tile = pred.shape[1]

    # class id per sublane row; compares broadcast the (1, TILE) labels over rows
    cls = lax.broadcasted_iota(jnp.int32, (C_PAD, tile), 0)
    oh_true = true == cls                                  # (128, TILE) bool
    oh_pred = pred == cls                                  # (128, TILE) bool
    # tp(c) = (true==c) & (pred==c) == (true==c) & (pred==true): only one
    # (1, TILE) compare instead of a third full (128, TILE) compare.
    oh_tp = jnp.logical_and(oh_true, pred == true)         # (128, TILE) bool

    # Stack the three masks on the sublane axis and reduce along the sample
    # axis with a single MXU matmul: (384, TILE) @ (TILE, 128) -> (384, 128)
    # per-class counts replicated across all 128 lanes (lane-dense store).
    lhs = jnp.concatenate(
        [oh_tp.astype(jnp.bfloat16),
         oh_true.astype(jnp.bfloat16),
         oh_pred.astype(jnp.bfloat16)], axis=0)            # (384, TILE) bf16
    ones_rhs = jnp.ones((tile, C_PAD), jnp.bfloat16)

    out_ref[...] += jnp.dot(lhs, ones_rhs,
                            preferred_element_type=jnp.float32)


@jax.jit
def _class_counts(pred_labels, true_labels):
    """Run the Pallas counts kernel. Returns a (NUM_CORES, 384, 128) f32 slab."""
    n = pred_labels.shape[0]

    # Static (per input shape) tile selection: multiple of 256, capped at TILE_MAX.
    tile = min(TILE_MAX, max(256, _round_up((n + NUM_CORES - 1) // NUM_CORES, 256)))
    tiles_per_core = max(1, -(-n // (NUM_CORES * tile)))
    n_pad = NUM_CORES * tiles_per_core * tile
    pad = n_pad - n

    # sentinel -1 never matches any class id, so padded samples contribute nothing
    pred_p = jnp.pad(pred_labels.astype(jnp.int32), (0, pad),
                     constant_values=-1).reshape(1, n_pad)
    true_p = jnp.pad(true_labels.astype(jnp.int32), (0, pad),
                     constant_values=-1).reshape(1, n_pad)

    in_map = lambda c, i: (0, c * tiles_per_core + i)

    counts = pl.pallas_call(
        _counts_kernel,
        out_shape=jax.ShapeDtypeStruct((NUM_CORES, ROWS, C_PAD), jnp.float32),
        grid=(NUM_CORES, tiles_per_core),
        in_specs=[
            pl.BlockSpec((1, tile), in_map),
            pl.BlockSpec((1, tile), in_map),
        ],
        out_specs=pl.BlockSpec((None, ROWS, C_PAD), lambda c, i: (c, 0, 0)),
        compiler_params=pltpu.CompilerParams(
            dimension_semantics=("parallel", "arbitrary")),
    )(pred_p, true_p)
    return counts


@functools.partial(jax.jit, static_argnums=(2,))
def _report_arrays(predict_labels, true_labels, n_classes):
    """Kernel + fused epilogue: everything the report needs in one device call."""
    counts = _class_counts(predict_labels, true_labels)      # (NUM_CORES, 384, 128)
    col = counts.sum(axis=0)[:, 0]                            # (384,)

    tp = col[0:n_classes]
    support = col[C_PAD:C_PAD + n_classes]
    pred_cnt = col[2 * C_PAD:2 * C_PAD + n_classes]

    # sklearn convention: 0 when the denominator is 0
    precision = jnp.where(pred_cnt > 0, tp / jnp.maximum(pred_cnt, 1.0), 0.0)
    recall = jnp.where(support > 0, tp / jnp.maximum(support, 1.0), 0.0)
    pr_sum = precision + recall
    f1 = jnp.where(pr_sum > 0,
                   2.0 * precision * recall / jnp.maximum(pr_sum, 1e-30), 0.0)

    correct = tp.sum()
    total_support = support.sum()
    w = support / jnp.maximum(total_support, 1.0)
    macro = jnp.stack([precision.mean(), recall.mean(), f1.mean()])
    weighted = jnp.stack([(precision * w).sum(), (recall * w).sum(), (f1 * w).sum()])
    return precision, recall, f1, support, correct, total_support, macro, weighted


class ClassificationReport:
    """Pallas/JAX port of the `calssification_report` module (sklearn semantics)."""

    def __init__(self, target_names):
        self.target_names = list(target_names)
        if len(self.target_names) > C_PAD:
            # TODO(synk): class ids >= 128 are not supported by the 128-lane slab.
            raise ValueError("ClassificationReport supports at most 128 classes")

    def __call__(self, predict_labels, true_labels):
        n_classes = len(self.target_names)
        n_samples = int(true_labels.shape[0])

        # single device round-trip for everything
        (precision, recall, f1, support, correct, total_support,
         macro, weighted) = jax.device_get(
            _report_arrays(jnp.asarray(predict_labels),
                           jnp.asarray(true_labels), n_classes))

        report = {}
        for i, name in enumerate(self.target_names):
            report[name] = {
                "precision": float(precision[i]),
                "recall": float(recall[i]),
                "f1-score": float(f1[i]),
                "support": float(support[i]),
            }
        report["accuracy"] = float(correct) / float(n_samples)
        report["macro avg"] = {
            "precision": float(macro[0]),
            "recall": float(macro[1]),
            "f1-score": float(macro[2]),
            "support": float(total_support),
        }
        report["weighted avg"] = {
            "precision": float(weighted[0]),
            "recall": float(weighted[1]),
            "f1-score": float(weighted[2]),
            "support": float(total_support),
        }
        return report


# alias matching the original (misspelled) module name
calssification_report = ClassificationReport


if __name__ == "__main__":
    key = jax.random.PRNGKey(0)
    k1, k2, k3 = jax.random.split(key, 3)

    n_classes = 5
    n_samples = 256
    target_names = [f"class_{i}" for i in range(n_classes)]

    true_labels = jax.random.randint(k1, (n_samples,), 0, n_classes, dtype=jnp.int32)
    # predictions correlated with truth: flip ~30% of labels randomly
    noise = jax.random.randint(k2, (n_samples,), 0, n_classes, dtype=jnp.int32)
    flip = jax.random.bernoulli(k3, 0.3, (n_samples,))
    predict_labels = jnp.where(flip, noise, true_labels).astype(jnp.int32)

    module = ClassificationReport(target_names)

    # run the Pallas reduction kernel once and block on its result
    counts = _class_counts(predict_labels, true_labels)
    jax.block_until_ready(counts)

    report = module(predict_labels, true_labels)
    assert "accuracy" in report and "macro avg" in report and "weighted avg" in report
    assert all(name in report for name in target_names)

    # lightweight sanity checks against a plain-JAX reference
    ref_acc = float(jnp.mean((predict_labels == true_labels).astype(jnp.float32)))
    assert abs(report["accuracy"] - ref_acc) < 1e-6
    total_sup = sum(report[name]["support"] for name in target_names)
    assert abs(total_sup - n_samples) < 1e-3

    # per-class reference check (plain JAX confusion counts)
    for c in range(n_classes):
        tp_ref = float(jnp.sum((true_labels == c) & (predict_labels == c)))
        sup_ref = float(jnp.sum(true_labels == c))
        pc_ref = float(jnp.sum(predict_labels == c))
        prec_ref = tp_ref / pc_ref if pc_ref > 0 else 0.0
        rec_ref = tp_ref / sup_ref if sup_ref > 0 else 0.0
        assert abs(report[target_names[c]]["precision"] - prec_ref) < 1e-5
        assert abs(report[target_names[c]]["recall"] - rec_ref) < 1e-5
        assert abs(report[target_names[c]]["support"] - sup_ref) < 1e-3

    print("KERNEL_OK")
</pallas_src>

<mosaic_0001>
module attributes {stable_mosaic.version = 11 : i64} {
  func.func @_counts_kernel(%arg0: i32, %arg1: i32, %arg2: memref<1x256xi32, #tpu.memory_space<vmem>>, %arg3: memref<1x256xi32, #tpu.memory_space<vmem>>, %arg4: memref<1x384x128xf32, #tpu.memory_space<vmem>>) attributes {dimension_semantics = [#tpu.dimension_semantics<parallel>, #tpu.dimension_semantics<arbitrary>], iteration_bounds = array<i64: 2, 1>, scalar_prefetch = 0 : i64, scratch_operands = 0 : i64, tpu.core_type = #tpu.core_type<tc>, window_params = [{transform_indices = @transform_0, window_bounds = array<i64: 1, 256>}, {transform_indices = @transform_1, window_bounds = array<i64: 1, 256>}, {transform_indices = @transform_2, window_bounds = array<i64: 1, 384, 128>}]} {
    %c0_i32 = arith.constant 0 : i32
    %0 = arith.cmpi eq, %arg1, %c0_i32 : i32
    %1 = arith.extui %0 : i1 to i32
    %c0_i32_0 = arith.constant 0 : i32
    %2 = arith.cmpi ne, %1, %c0_i32_0 : i32
    scf.if %2 {
      %cst_11 = arith.constant 0.000000e+00 : f32
      %31 = vector.broadcast %cst_11 : f32 to vector<384x128xf32>
      %c0_12 = arith.constant 0 : index
      %c0_13 = arith.constant 0 : index
      %c0_14 = arith.constant 0 : index
      %32 = vector.load %arg4[%c0_12, %c0_13, %c0_14] : memref<1x384x128xf32, #tpu.memory_space<vmem>>, vector<1x384x128xf32>
      %33 = vector.shape_cast %32 : vector<1x384x128xf32> to vector<384x128xf32>
      %34 = vector.shape_cast %31 : vector<384x128xf32> to vector<1x384x128xf32>
      tpu.vector_store %arg4[%c0_12, %c0_13, %c0_14], %34 {strides = array<i32>} : memref<1x384x128xf32, #tpu.memory_space<vmem>>, vector<1x384x128xf32>,
    } else {
    }
    %c0 = arith.constant 0 : index
    %c0_1 = arith.constant 0 : index
    %3 = vector.load %arg2[%c0, %c0_1] : memref<1x256xi32, #tpu.memory_space<vmem>>, vector<1x256xi32>
    %c0_2 = arith.constant 0 : index
    %c0_3 = arith.constant 0 : index
    %4 = vector.load %arg3[%c0_2, %c0_3] : memref<1x256xi32, #tpu.memory_space<vmem>>, vector<1x256xi32>
    %5 = tpu.iota {dimensions = array<i32: 0>} : vector<128x256xi32>
    %6 = vector.broadcast %4 : vector<1x256xi32> to vector<128x256xi32>
    %7 = arith.cmpi eq, %6, %5 : vector<128x256xi32>
    %8 = vector.broadcast %3 : vector<1x256xi32> to vector<128x256xi32>
    %9 = arith.cmpi eq, %8, %5 : vector<128x256xi32>
    %10 = arith.cmpi eq, %3, %4 : vector<1x256xi32>
    %11 = vector.broadcast %10 : vector<1x256xi1> to vector<128x256xi1>
    %12 = arith.andi %7, %11 : vector<128x256xi1>
    %13 = arith.extui %12 : vector<128x256xi1> to vector<128x256xi32>
    %14 = arith.sitofp %13 : vector<128x256xi32> to vector<128x256xf32>
    %15 = arith.truncf %14 : vector<128x256xf32> to vector<128x256xbf16>
    %16 = arith.extui %7 : vector<128x256xi1> to vector<128x256xi32>
    %17 = arith.sitofp %16 : vector<128x256xi32> to vector<128x256xf32>
    %18 = arith.truncf %17 : vector<128x256xf32> to vector<128x256xbf16>
    %19 = arith.extui %9 : vector<128x256xi1> to vector<128x256xi32>
    %20 = arith.sitofp %19 : vector<128x256xi32> to vector<128x256xf32>
    %21 = arith.truncf %20 : vector<128x256xf32> to vector<128x256xbf16>
    %22 = tpu.concatenate %15, %18, %21 in 0 : vector<128x256xbf16>, vector<128x256xbf16>, vector<128x256xbf16> -> vector<384x256xbf16>
    %cst = arith.constant 1.000000e+00 : bf16
    %23 = vector.broadcast %cst : bf16 to vector<256x128xbf16>
    %c0_4 = arith.constant 0 : index
    %c0_5 = arith.constant 0 : index
    %c0_6 = arith.constant 0 : index
    %24 = vector.load %arg4[%c0_4, %c0_5, %c0_6] : memref<1x384x128xf32, #tpu.memory_space<vmem>>, vector<1x384x128xf32>
    %25 = vector.shape_cast %24 : vector<1x384x128xf32> to vector<384x128xf32>
    %cst_7 = arith.constant dense<0.000000e+00> : vector<384x128xf32>
    %26 = tpu.matmul %22, %23, %cst_7 {dimension_numbers = #tpu.dot_dimension_numbers<[1], [0], [0], [1], [0, 0, 1, 1], [], []>} : vector<384x256xbf16>, vector<256x128xbf16>, vector<384x128xf32> -> vector<384x128xf32>
    %27 = arith.addf %25, %26 : vector<384x128xf32>
    %c0_8 = arith.constant 0 : index
    %c0_9 = arith.constant 0 : index
    %c0_10 = arith.constant 0 : index
    %28 = vector.load %arg4[%c0_8, %c0_9, %c0_10] : memref<1x384x128xf32, #tpu.memory_space<vmem>>, vector<1x384x128xf32>
    %29 = vector.shape_cast %28 : vector<1x384x128xf32> to vector<384x128xf32>
    %30 = vector.shape_cast %27 : vector<384x128xf32> to vector<1x384x128xf32>
    tpu.vector_store %arg4[%c0_8, %c0_9, %c0_10], %30 {strides = array<i32>} : memref<1x384x128xf32, #tpu.memory_space<vmem>>, vector<1x384x128xf32>,
    return
  }
  func.func @transform_0(%arg0: i32, %arg1: i32) -> (i32, i32) {
    %c1_i32 = arith.constant 1 : i32
    %0 = arith.muli %arg0, %c1_i32 : i32
    %1 = arith.addi %0, %arg1 : i32
    %c0_i32 = arith.constant 0 : i32
    %c0_i32_0 = arith.constant 0 : i32
    return %c0_i32, %1 : i32, i32
  }
  func.func @transform_1(%arg0: i32, %arg1: i32) -> (i32, i32) {
    %c1_i32 = arith.constant 1 : i32
    %0 = arith.muli %arg0, %c1_i32 : i32
    %1 = arith.addi %0, %arg1 : i32
    %c0_i32 = arith.constant 0 : i32
    %c0_i32_0 = arith.constant 0 : i32
    return %c0_i32, %1 : i32, i32
  }
  func.func @transform_2(%arg0: i32, %arg1: i32) -> (i32, i32, i32) {
    %c0_i32 = arith.constant 0 : i32
    %c0_i32_0 = arith.constant 0 : i32
    %c0_i32_1 = arith.constant 0 : i32
    return %arg0, %c0_i32, %c0_i32_0 : i32, i32, i32
  }
}

</mosaic_0001>

<bundles_post_ra>
// kernel: _class_counts.1
= control target key start
LH: loop header
LB: loop body
LE: loop exit
PB: predicated region body
PF: predicated region fallthrough
CT: control target
= control target key end

     0   :  { %7 = vsyncpa [#allocation3], 0  ;;  %s2651_s0 = inlined_call_operand.vmem [shape: s32[1,512], index: 0, kind: input, shape index: {}]   ;;  %s2652_s1 = inlined_call_operand.vmem [shape: s32[1,512], index: 1, kind: input, shape index: {}]   ;;  %s2653_s2 = inlined_call_operand.hbm [shape: f32[2,384,128], index: 2, kind: output, shape index: {}]  }
   0x1   :  { %9 = vsyncpa [#allocation3 + $0x1], 0  ;;  %s1480_s9 = smov 0   ;;  %s1482_s10 = smov 0  }
   0x2   :  { %s1484_s11 = smov 0   ;;  %s1486_s12 = smov 0  }
   0x3   :  { %s1488_s13 = smov 0   ;;  %s1490_s14 = smov 0  }
   0x4 LB: > { %s1082_s15 = sadd.s32 4294967295, %s1457_s14   ;;  %s1083_s16 = sadd.s32 4294967294, %s1457_s14   ;;  %s1457_s14 = sphi %s1490_s14, %s15_s14   ;;  %s1453_s13 = sphi %s1488_s13, %s2908_s13   ;;  %s1449_s12 = sphi %s1486_s12, %s2907_s12   ;;  %s1445_s11 = sphi %s1484_s11, %s2906_s11   ;;  %s1441_s10 = sphi %s1482_s10, %s2905_s10   ;;  %s1437_s9 = sphi %s1480_s9, %s2904_s9  }
   0x5   : > { %s27_s17 = sadd.s32 1, %s1453_s13  ;;  %s90_s18 = sadd.s32 1, %s1445_s11 }
   0x6   : > { %p29_p0 = scmp.ge.s32.totalorder %s27_s17, 2  ;;  %p100_p1 = scmp.ne.s32.totalorder %s1445_s11, %s1441_s10 }
   0x7   : > { %p101_p2 = scmp.eq.s32.totalorder %s1082_s15, 1  ;;  %p106_p3 = scmp.ne.s32.totalorder %s1441_s10, %s1437_s9 }
   0x8   : > { %s2910_s17 = smov (%p29_p0, %s27_s17), 0  ;;  %p107_p5 = scmp.eq.s32.totalorder %s1083_s16, 1 }
   0x9   : > { %p1520_p4 = por %p101_p2, %p100_p1  ;;  %s87_s20 = ssub.s32 %s1453_s13, %s2910_s17 }
   0xa   : > { %p1086_p6 = scmp.ge.s32.totalorder %s1457_s14, 1  ;;  %p88_p7 = scmp.eq.s32.totalorder %s87_s20, 0 }
   0xb   : > { %p1527_p8 = por %p107_p5, %p106_p3  ;;  %p145_p9 = scmp.lt.s32.totalorder %s1457_s14, 3 }
   0xc   : > { %s1533_s22 = scalar_select %p88_p7, %s1445_s11, %s90_s18  }
   0xd   : > { %p146_p10 = pnand %p1086_p6, %p145_p9 }
   0xe   : > { %s1087_s23 = sshll.u32 (!%p146_p10), %s1449_s12, 1  ;;  %v242_v0 = vlaneseq (!%p146_p10)  ;;  %v1459_v1 = vmov (!%p146_p10), 0   ;;  %v1460_v2 = vmov (!%p146_p10), 1065369472   ;;  %v2678_v16 = vmov (!%p146_p10), 0  ;;  %s169_s30 = sand.u32 (!%p146_p10), 1, %s1441_s10  }
   0xf   : > { %149 = sbr.rel (%p146_p10) target bundleno = 402 (0x192), region = 28  ;;  %671 = vmatprep.subr.bf16.mxu0 (!%p146_p10), %v1459_v1  ;;  %1284 = vmatprep.subr.bf16.mxu1 (!%p146_p10), %v1459_v1  ;;  %p174_p11 = scmp.lt.s32.totalorder (!%p146_p10), %s1087_s23, 3  ;;  %v2680_v17 = vmov (!%p146_p10), 0  ;;  %v1461_v18 = vmov (!%p146_p10), 1.0|1.0   ;;  %v2682_v19 = vmov (!%p146_p10), 0 }
  0x10   : > { %672 = vmatpush1.bf16.msra.mxu0 (!%p146_p10), %v1460_v2  ;;  %1300 = vmatpush1.bf16.msra.mxu1 (!%p146_p10), %v1460_v2  ;;  %v1540_v3 = vshrl.u32 (!%p146_p10), %v242_v0, 7  ;;  %v2684_v25 = vmov (!%p146_p10), 0  ;;  %v2686_v26 = vmov (!%p146_p10), 0  ;;  %v2688_v33 = vmov (!%p146_p10), 0  ;;  %s1316_s3 = smul.u32 (!%p146_p10), 384, %s169_s30  ;;  %s1462_s18 = smov (!%p146_p10), [#allocation2]  }
  0x11   : > { %673 = vmatprep.subr.bf16.mxu0 (!%p146_p10), %v1459_v1  ;;  %1285 = vmatprep.subr.bf16.mxu1 (!%p146_p10), %v1459_v1  ;;  %v2690_v34 = vmov (!%p146_p10), 0  ;;  %v2692_v36 = vmov (!%p146_p10), 0  ;;  %v2694_v38 = vmov (!%p146_p10), 0  ;;  %v2698_v40 = vmov (!%p146_p10), 0  ;;  %s1317_s5 = smul.u32 (!%p146_p10), 6144, %s1449_s12  ;;  %s2605_s12 = scalar_lea.sflag (!%p146_p10), [#allocation3], %s169_s30 }
  0x12   : > { %v1545_v4 = vsub.s32 (!%p146_p10), 0, %v1540_v3  ;;  %v265_v5 = vsub.s32 (!%p146_p10), 1, %v1540_v3  ;;  %v1555_v6 = vadd.s32 (!%p146_p10), 8, %v1540_v3  ;;  %v1558_v7 = vadd.s32 (!%p146_p10), 64, %v1540_v3  ;;  %s2544_s4 = scalar_lea.vmem (!%p146_p10), [#allocation2], %s1316_s3  ;;  %s1383_s20 = sshll.u32 (!%p146_p10), %s1462_s18, 4  ;;  %s1384_s20 = int_to_ptr.vmem [resolvable:$false] %s1383_s20 }
  0x13   : > { %v1563_v10 = vadd.s32 (!%p146_p10), 72, %v1540_v3  ;;  %v1631_v20 = vadd.s32 (!%p146_p10), 48, %v1540_v3  ;;  %v1634_v21 = vadd.s32 (!%p146_p10), 56, %v1540_v3  ;;  %v1644_v22 = vadd.s32 (!%p146_p10), 112, %v1540_v3  ;;  %s1006_s6 = sshll.u32 (!%p146_p10), %s2544_s4, 4  ;;  %s2595_s15 = scalar_lea.hbm (!%p146_p10), %s2653_s2, %s1317_s5  ;;  %s2597_s6 = int_to_ptr.vmem [resolvable:$true] %s1006_s6 }
  0x14   : > { %674 = vmatpush1.bf16.msra.mxu0 (!%p146_p10), %v1460_v2  ;;  %1301 = vmatpush1.bf16.msra.mxu1 (!%p146_p10), %v1460_v2  ;;  %v1649_v23 = vadd.s32 (!%p146_p10), 120, %v1540_v3  ;;  %v1686_v27 = vadd.s32 (!%p146_p10), 32, %v1540_v3  ;;  %v1691_v28 = vadd.s32 (!%p146_p10), 40, %v1540_v3  ;;  %v1700_v29 = vadd.s32 (!%p146_p10), 80, %v1540_v3  ;;  %s1379_s16 = scalar_lea.vmem (!%p146_p10), %s2597_s6, 6144  ;;  %p1386_p1 = scmp.lt.s32.totalorder (!%p146_p10), %s2597_s6, %s1384_s20 }
  0x15   : > { %675 = vmatprep.subr.bf16.mxu0 (!%p146_p10), %v1459_v1  ;;  %1286 = vmatprep.subr.bf16.mxu1 (!%p146_p10), %v1459_v1  ;;  %v1703_v30 = vadd.s32 (!%p146_p10), 88, %v1540_v3  ;;  %v1710_v31 = vadd.s32 (!%p146_p10), 96, %v1540_v3  ;;  %v1721_v32 = vadd.s32 (!%p146_p10), 104, %v1540_v3  ;;  %v1818_v37 = vadd.s32 (!%p146_p10), 16, %v1540_v3  ;;  %p1380_p12 = scmp.ne.s32.totalorder (!%p146_p10), %s2597_s6, %s1379_s16 }
  0x16   : > { %s2912_s23 = smov (!%p174_p11, %s1087_s23), 3  ;;  %v1825_v39 = vadd.s32 24, %v1540_v3  ;;  %v2707_v43 = vmov 0  ;;  %v2711_v44 = vmov 0  ;;  %v2714_v45 = vmov 0 }
  0x17   : > { %s176_s26 = scalar_lea.vmem %s2651_s0, %s2912_s23  ;;  %s183_s29 = scalar_lea.vmem %s2652_s1, %s2912_s23  ;;  %v2718_v46 = vmov 0  ;;  %v2722_v47 = vmov 0  ;;  %v2725_v48 = vmov 0  ;;  %v2735_v52 = vmov 0 }
  0x18   : > { %v240_v8 = vld [vmem:[%s176_s26] sm:$0x3]  ;;  %676 = vmatpush1.bf16.msra.mxu0 %v1460_v2  ;;  %1302 = vmatpush1.bf16.msra.mxu1 %v1460_v2  ;;  %v2737_v53 = vmov 0  ;;  %v2741_v54 = vmov 0  ;;  %v2745_v55 = vmov 0  ;;  %v2764_v59 = vmov 0  ;;  %p1381_p13 = pnand %p1380_p12, %p1520_p4 }
  0x19   : > { %v241_v9 = vld [vmem:[%s183_s29] sm:$0x3]  ;;  %v1572_v13 = vrot.slane %v240_v8, %v265_v5  ;;  %677 = vmatprep.subr.bf16.mxu0 %v1459_v1  ;;  %1287 = vmatprep.subr.bf16.mxu1 %v1459_v1  ;;  %v1652_v24 = vrot.slane %v240_v8, %v1545_v4  ;;  %v2768_v60 = vmov 0  ;;  %v2775_v62 = vmov 0  ;;  %s1385_s23 = scalar_lea.vmem %s1384_s20, 12288 }
  0x1a   : > { %v1568_v11 = vrot.slane %v241_v9, %v1545_v4  ;;  %v1570_v12 = vrot.slane %v241_v9, %v265_v5  ;;  %vm339_vm0 = vcmp.eq.s32.totalorder %v240_v8, %v241_v9  ;;  %v2813_v8 = vmov 0  ;;  %p1382_p0 = pneg %p1381_p13  ;;  %p1387_p2 = scmp.lt.s32.totalorder %s1385_s23, %s1379_s16 }
  0x1b   : > { %v1579_v14 = vsel %vm339_vm0, 1, %v1459_v1  ;;  %v2817_v9 = vmov 0 }
  0x1c   : > { %vm268_vm1 = vcmp.eq.s32.totalorder %v1570_v12, %v1540_v3  ;;  %vm270_vm2 = vcmp.eq.s32.totalorder %v1570_v12, %v1555_v6  ;;  %vm284_vm3 = vcmp.eq.s32.totalorder %v1570_v12, %v1558_v7  ;;  %v348_v15 = vrot.slane %v1579_v14, %v265_v5  ;;  %678 = vmatpush1.bf16.msra.mxu0 %v1460_v2  ;;  %p1388_p3 = por %p1387_p2, %p1386_p1 }
  0x1d   : > { %vm286_vm4 = vcmp.eq.s32.totalorder %v1570_v12, %v1563_v10  ;;  %vm1594_vm5 = vmpackc.low %vm270_vm2, %vm268_vm1  ;;  %vm2655_vm7 = vcmp.eq.s32.totalorder %v1568_v11, %v1540_v3  ;;  %vm2654_vm8 = vcmp.eq.s32.totalorder %v1568_v11, %v1555_v6  ;;  %1303 = vmatpush1.bf16.msra.mxu1 %v1460_v2  ;;  %679 = vmatprep.subr.bf16.mxu0 %v1459_v1 }
  0x1e   : > { %v2679_v16 = vsel %vm1594_vm5, 4294967295, %v2678_v16  ;;  %vm1233_vm6 = vmpackc.low %vm286_vm4, %vm284_vm3  ;;  %vm1610_vm9 = vcmp.eq.s32.totalorder %v348_v15, 1  ;;  %1288 = vmatprep.subr.bf16.mxu1 %v1459_v1  ;;  %vm2657_vm0 = vcmp.eq.s32.totalorder %v1570_v12, %v1631_v20  ;;  %v344_v35 = vrot.slane %v1579_v14, %v1545_v4  ;;  %p1389_p5 = pnand %p1388_p3, %p1382_p0 }
  0x1f   : > { %v2681_v17 = vsel %vm1610_vm9, 4294967295, %v2680_v17  ;;  %1234 = vmatprep.mubr.msk.bf16.mxu1 %vm1233_vm6, %v1461_v18  ;;  %vm1621_vm10 = vmpackc.low %vm2654_vm8, %vm2655_vm7  ;;  %vm2697_vm6 = vcmp.eq.s32.totalorder %v1572_v13, %v1555_v6  ;;  %vm2710_vm5 = vcmp.eq.s32.totalorder %v1652_v24, %v1555_v6  ;;  %v2801_v4 = vmov 0 }
  0x20   : > { %v2683_v19 = vsel %vm1621_vm10, 4294967295, %v2682_v19  ;;  %vm352_vm11 = vmand %vm268_vm1, %vm1610_vm9  ;;  %vm2656_vm1 = vcmp.eq.s32.totalorder %v1570_v12, %v1634_v21  ;;  %680 = vmatpush1.bf16.msra.mxu0 %v1460_v2  ;;  %vm2709_vm10 = vcmp.eq.s32.totalorder %v1652_v24, %v1540_v3  ;;  %v2822_v14 = vmov 0 }
  0x21   : > { %vm354_vm12 = vmand %vm270_vm2, %vm1610_vm9  ;;  %vm2659_vm2 = vcmp.eq.s32.totalorder %v1570_v12, %v1644_v22  ;;  %1304 = vmatpush1.bf16.msra.mxu1 %v1460_v2  ;;  %681 = vmatprep.subr.bf16.mxu0 %v1459_v1 }
  0x22   : > { %vm1185_vm13 = vmpackc.low %vm354_vm12, %vm352_vm11  ;;  %1289 = vmatprep.subr.bf16.mxu1 %v1459_v1  ;;  %vm2696_vm12 = vcmp.eq.s32.totalorder %v1572_v13, %v1540_v3 }
  0x23   : > { %1186 = vmatprep.mubr.msk.bf16.mxu0 %vm1185_vm13, %v1461_v18  ;;  %vm1660_vm14 = vmand %vm284_vm3, %vm1610_vm9  ;;  %vm2658_vm3 = vcmp.eq.s32.totalorder %v1570_v12, %v1649_v23 }
  0x24   : > { %v2685_v25 = vsel %vm1660_vm14, 4294967295, %v2684_v25  ;;  %vm1669_vm15 = vmand %vm286_vm4, %vm1610_vm9  ;;  %682 = vmatpush1.bf16.msra.mxu0 %v1460_v2 }
  0x25   : > { %v2687_v26 = vsel %vm1669_vm15, 4294967295, %v2686_v26  ;;  %1305 = vmatpush1.bf16.msra.mxu1 %v1460_v2  ;;  %683 = vmatprep.subr.bf16.mxu0 %v1459_v1  ;;  %vm1782_vm13 = vmand %vm2657_vm0, %vm1610_vm9  ;;  %vm2700_vm0 = vcmp.eq.s32.totalorder %v1568_v11, %v1540_v3  ;;  %vm2724_vm15 = vcmp.eq.s32.totalorder %v1568_v11, %v1818_v37  ;;  %v2797_v3 = vmov 0 }
  0x26   : > { %1290 = vmatprep.subr.bf16.mxu1 %v1459_v1  ;;  %v2689_v33 = vsel %vm1782_vm13, 4294967295, %v2688_v33  ;;  %vm1793_vm4 = vmand %vm2656_vm1, %vm1610_vm9  ;;  %vm1820_vm1 = vcmp.eq.s32.totalorder %v344_v35, 1  ;;  %vm2732_vm13 = vcmp.eq.s32.totalorder %v1570_v12, %v1691_v28  ;;  %v2848_v35 = vmov 0 }
  0x27   : > { %v2691_v34 = vsel %vm1793_vm4, 4294967295, %v2690_v34  ;;  %vm1809_vm7 = vmpackc.low %vm2658_vm3, %vm2659_vm2  ;;  %v2695_v38 = vsel %vm1820_vm1, 4294967295, %v2694_v38  ;;  %vm2703_vm2 = vcmp.eq.s32.totalorder %v1568_v11, %v1555_v6 }
  0x28   : > { %684 = vmatpush1.bf16.msra.mxu0 %v1460_v2  ;;  %v2693_v36 = vsel %vm1809_vm7, 4294967295, %v2692_v36  ;;  %vm1843_vm8 = vmpackc.low %vm2697_vm6, %vm2696_vm12  ;;  %vm2717_vm6 = vcmp.eq.s32.totalorder %v1568_v11, %v1563_v10 }
  0x29   : > { %1306 = vmatpush1.bf16.msra.mxu1 %v1460_v2  ;;  %685 = vmatprep.subr.bf16.mxu0 %v1459_v1  ;;  %v2699_v40 = vsel %vm1843_vm8, 4294967295, %v2698_v40  ;;  %vm1852_vm3 = vmand %vm2700_vm0, %vm1820_vm1  ;;  %vm2706_vm0 = vcmp.eq.s32.totalorder %v1570_v12, %v1818_v37  ;;  %vm2713_vm8 = vcmp.eq.s32.totalorder %v1570_v12, %v1825_v39 }
  0x2a   : > { %1291 = vmatprep.subr.bf16.mxu1 %v1459_v1  ;;  %vm1861_vm11 = vmand %vm2703_vm2, %vm1820_vm1  ;;  %vm2720_vm2 = vcmp.eq.s32.totalorder %v1570_v12, %v1700_v29 }
  0x2b   : > { %vm1874_vm12 = vmand %vm2706_vm0, %vm1610_vm9 }
  0x2c   : > { %686 = vmatpush1.bf16.msra.mxu0 %v1460_v2  ;;  %v2708_v43 = vsel %vm1874_vm12, 4294967295, %v2707_v43  ;;  %vm1890_vm0 = vmpackc.low %vm2710_vm5, %vm2709_vm10  ;;  %vm2716_vm10 = vcmp.eq.s32.totalorder %v1568_v11, %v1558_v7  ;;  %vm2664_vm5 = vcmp.eq.s32.totalorder %v1570_v12, %v1686_v27  ;;  %vm2739_vm12 = vcmp.eq.s32.totalorder %v1568_v11, %v1700_v29 }
  0x2d   : > { %1307 = vmatpush1.bf16.msra.mxu1 %v1460_v2  ;;  %687 = vmatprep.subr.bf16.mxu0 %v1459_v1  ;;  %v2712_v44 = vsel %vm1890_vm0, 4294967295, %v2711_v44  ;;  %vm1899_vm14 = vmand %vm2713_vm8, %vm1610_vm9 }
  0x2e   : > { %1292 = vmatprep.subr.bf16.mxu1 %v1459_v1  ;;  %v2715_v45 = vsel %vm1899_vm14, 4294967295, %v2714_v45  ;;  %vm1921_vm0 = vmpackc.low %vm2717_vm6, %vm2716_vm10  ;;  %vm2721_vm6 = vcmp.eq.s32.totalorder %v1570_v12, %v1703_v30  ;;  %vm2740_vm14 = vcmp.eq.s32.totalorder %v1568_v11, %v1703_v30 }
  0x2f   : > { %v2719_v46 = vsel %vm1921_vm0, 4294967295, %v2718_v46  ;;  %vm1939_vm10 = vmpackc.low %vm2721_vm6, %vm2720_vm2  ;;  %vm2727_vm2 = vcmp.eq.s32.totalorder %v1568_v11, %v1825_v39 }
  0x30   : > { %688 = vmatpush1.bf16.msra.mxu0 %v1460_v2  ;;  %v2723_v47 = vsel %vm1939_vm10, 4294967295, %v2722_v47  ;;  %vm1950_vm7 = vmand %vm2724_vm15, %vm1820_vm1  ;;  %vm294_vm10 = vcmp.eq.s32.totalorder %v1570_v12, %v1721_v32 }
  0x31   : > { %1308 = vmatpush1.bf16.msra.mxu1 %v1460_v2  ;;  %689 = vmatprep.subr.bf16.mxu0 %v1459_v1  ;;  %v2726_v48 = vsel %vm1950_vm7, 4294967295, %v2725_v48  ;;  %vm1961_vm6 = vmand %vm2727_vm2, %vm1820_vm1  ;;  %vm2756_vm7 = vnez %v2708_v43 }
  0x32   : > { %1293 = vmatprep.subr.bf16.mxu1 %v1459_v1  ;;  %vm1972_vm15 = vmand %vm2664_vm5, %vm1610_vm9  ;;  %vm292_vm5 = vcmp.eq.s32.totalorder %v1570_v12, %v1710_v31 }
  0x33   : > { %vm1987_vm4 = vmand %vm2732_vm13, %vm1610_vm9  ;;  %vm2750_vm13 = vnez %v2719_v46 }
  0x34   : > { %690 = vmatpush1.bf16.msra.mxu0 %v1460_v2  ;;  %vm1997_vm2 = vmand %vm292_vm5, %vm1610_vm9 }
  0x35   : > { %1309 = vmatpush1.bf16.msra.mxu1 %v1460_v2  ;;  %691 = vmatprep.subr.bf16.mxu0 %v1459_v1  ;;  %v2736_v52 = vsel %vm1997_vm2, 4294967295, %v2735_v52  ;;  %vm2003_vm8 = vmand %vm294_vm10, %vm1610_vm9 }
  0x36   : > { %1294 = vmatprep.subr.bf16.mxu1 %v1459_v1  ;;  %v2738_v53 = vsel %vm2003_vm8, 4294967295, %v2737_v53  ;;  %vm2019_vm1 = vmpackc.low %vm2740_vm14, %vm2739_vm12  ;;  %vm2743_vm14 = vcmp.eq.s32.totalorder %v1572_v13, %v1686_v27  ;;  %vm2744_vm12 = vcmp.eq.s32.totalorder %v1572_v13, %v1691_v28  ;;  %vm2774_vm8 = vcmp.eq.s32.totalorder %v1572_v13, %v1634_v21 }
  0x37   : > { %v2742_v54 = vsel %vm2019_vm1, 4294967295, %v2741_v54  ;;  %vm2041_vm9 = vmpackc.low %vm2744_vm12, %vm2743_vm14  ;;  %vm2751_vm14 = vnez %v2695_v38  ;;  %vm2752_vm12 = vcmp.eq.s32.totalorder %v1568_v11, %v1686_v27 }
  0x38   : > { %692 = vmatpush1.bf16.msra.mxu0 %v1460_v2  ;;  %v2746_v55 = vsel %vm2041_vm9, 4294967295, %v2745_v55  ;;  %vm2045_vm1 = vmpackc.low %vm294_vm10, %vm292_vm5  ;;  %vm2755_vm10 = vnez %v2715_v45 }
  0x39   : > { %1310 = vmatpush1.bf16.msra.mxu1 %v1460_v2  ;;  %693 = vmatprep.subr.bf16.mxu0 %v1459_v1  ;;  %vm2749_vm0 = vmpackc.low %vm1861_vm11, %vm1852_vm3  ;;  %vm2758_vm11 = vnez %v2723_v47 }
  0x3a   : > { %1295 = vmatprep.subr.bf16.mxu1 %v1459_v1  ;;  %vm2063_vm5 = vmand %vm2752_vm12, %vm2751_vm14  ;;  %vm2762_vm12 = vcmp.eq.s32.totalorder %v1652_v24, %v1686_v27 }
  0x3b   : > { %vm2757_vm3 = vmpackc.low %vm2755_vm10, %vm2756_vm7  ;;  %vm2763_vm7 = vcmp.eq.s32.totalorder %v1652_v24, %v1691_v28 }
  0x3c   : > { %694 = vmatpush1.bf16.msra.mxu0 %v1460_v2  ;;  %vm2091_vm10 = vmpackc.low %vm2763_vm7, %vm2762_vm12  ;;  %vm2770_vm12 = vcmp.eq.s32.totalorder %v1570_v12, %v1649_v23 }
  0x3d   : > { %1311 = vmatpush1.bf16.msra.mxu1 %v1460_v2  ;;  %695 = vmatprep.subr.bf16.mxu0 %v1459_v1  ;;  %v2765_v59 = vsel %vm2091_vm10, 4294967295, %v2764_v59  ;;  %vm2781_vm10 = vnez %v2726_v48 }
  0x3e   : > { %1296 = vmatprep.subr.bf16.mxu1 %v1459_v1 }
  0x40   : > { %696 = vmatpush1.bf16.msra.mxu0 %v1460_v2 }
  0x41   : > { %1312 = vmatpush1.bf16.msra.mxu1 %v1460_v2  ;;  %697 = vmatprep.subr.bf16.mxu0 %v1459_v1 }
  0x42   : > { %1297 = vmatprep.subr.bf16.mxu1 %v1459_v1 }
  0x44   : > { %698 = vmatpush1.bf16.msra.mxu0 %v1460_v2 }
  0x45   : > { %1313 = vmatpush1.bf16.msra.mxu1 %v1460_v2  ;;  %699 = vmatprep.subr.bf16.mxu0 %v1459_v1 }
  0x46   : > { %1298 = vmatprep.subr.bf16.mxu1 %v1459_v1 }
  0x48   : > { %700 = vmatpush1.bf16.msra.mxu0 %v1460_v2 }
  0x49   : > { %1314 = vmatpush1.bf16.msra.mxu1 %v1460_v2  ;;  %701 = vmatprep.subr.bf16.mxu0 %v1459_v1 }
  0x4a   : > { %1299 = vmatprep.subr.bf16.mxu1 %v1459_v1 }
  0x4c   : > { %702 = vmatpush1.bf16.msra.mxu0 %v1460_v2 }
  0x4d   : > { %1315 = vmatpush1.bf16.msra.mxu1 %v1460_v2  ;;  %v2793_v2 = vmov 0 }
  0x4f   : > { %1188 = vmatmul.mubr.msk.bf16.vlgmr.msra.gmra.mrb[0].mxu0 %vm2749_vm0, %v1461_v18  ;;  %vm2759_vm0 = vcmp.eq.s32.totalorder %v1568_v11, %v1691_v28 }
  0x50   : > { %1236 = vmatmul.mubr.msk.bf16.vlgmr.msra.gmra.mrb[0].mxu1 %vm2750_vm13, %v1461_v18  ;;  %1190 = vmatprep.mubr.msk.bf16.mxu0 %vm2757_vm3, %v1461_v18  ;;  %vm2081_vm13 = vmand %vm2759_vm0, %vm2751_vm14  ;;  %vm2766_vm3 = vnez %v2681_v17  ;;  %vm2778_vm0 = vcmp.eq.s32.totalorder %v1568_v11, %v1721_v32 }
  0x51   : > { %1238 = vmatprep.mubr.msk.bf16.mxu1 %vm2758_vm11, %v1461_v18  ;;  %vm2767_vm11 = vcmp.eq.s32.totalorder %v1570_v12, %v1644_v22  ;;  %vm2113_vm7 = vmand %vm2770_vm12, %vm2766_vm3  ;;  %vm2773_vm12 = vcmp.eq.s32.totalorder %v1572_v13, %v1631_v20 }
  0x52   : > { %vm2100_vm9 = vmand %vm2767_vm11, %vm2766_vm3  ;;  %vm2777_vm11 = vcmp.eq.s32.totalorder %v1568_v11, %v1710_v31 }
  0x53   : > { %v2769_v60 = vsel %vm2100_vm9, 4294967295, %v2768_v60  ;;  %vm2135_vm3 = vmpackc.low %vm2774_vm8, %vm2773_vm12  ;;  %vm2783_vm8 = vnez %v2742_v54  ;;  %vm2784_vm12 = vcmp.eq.s32.totalorder %v1568_v11, %v1631_v20 }
  0x54   : > { %v2776_v62 = vsel %vm2135_vm3, 4294967295, %v2775_v62  ;;  %vm2145_vm2 = vmpackc.low %vm2778_vm0, %vm2777_vm11  ;;  %vm2800_vm11 = vcmp.eq.s32.totalorder %v1652_v24, %v1563_v10  ;;  %vm2816_vm3 = vcmp.eq.s32.totalorder %v1568_v11, %v1825_v39 }
  0x55   : > { %vm2782_vm9 = vmpackc.low %vm1961_vm6, %vm2781_vm10 }
  0x56   : > { %vm2163_vm0 = vmand %vm2784_vm12, %vm2751_vm14  ;;  %vm2795_vm12 = vcmp.eq.s32.totalorder %v1572_v13, %v1558_v7 }
  0x57   : > { %1192 = vmatmul.mubr.msk.bf16.gmra.mrb[4].mxu0 %vm2782_vm9, %v1461_v18  ;;  %vm2787_vm6 = vmpackc.low %vm1987_vm4, %vm1972_vm15  ;;  %vm2788_vm9 = vcmp.eq.s32.totalorder %v1568_v11, %v1634_v21  ;;  %vm2791_vm15 = vcmp.eq.s32.totalorder %v1652_v24, %v1631_v20  ;;  %vm2799_vm4 = vcmp.eq.s32.totalorder %v1652_v24, %v1558_v7 }
  0x58   : > { %1240 = vmatmul.mubr.msk.bf16.gmra.mrb[4].mxu1 %vm2783_vm8, %v1461_v18  ;;  %1194 = vmatprep.mubr.msk.bf16.mxu0 %vm2787_vm6, %v1461_v18  ;;  %vm2181_vm10 = vmand %vm2788_vm9, %vm2751_vm14  ;;  %vm2796_vm6 = vcmp.eq.s32.totalorder %v1572_v13, %v1563_v10 }
  0x59   : > { %1242 = vmatprep.mubr.msk.bf16.mxu1 %vm2045_vm1, %v1461_v18  ;;  %vm2792_vm1 = vcmp.eq.s32.totalorder %v1652_v24, %v1634_v21  ;;  %vm2205_vm9 = vmpackc.low %vm2796_vm6, %vm2795_vm12  ;;  %vm2803_vm12 = vcmp.eq.s32.totalorder %v1568_v11, %v1644_v22  ;;  %vm2804_vm6 = vcmp.eq.s32.totalorder %v1568_v11, %v1649_v23 }
  0x5a   : > { %vm2195_vm8 = vmpackc.low %vm2792_vm1, %vm2791_vm15  ;;  %v2798_v3 = vsel %vm2205_vm9, 4294967295, %v2797_v3  ;;  %vm2811_vm1 = vcmp.eq.s32.totalorder %v1572_v13, %v1700_v29 }
  0x5b   : > { %v2794_v2 = vsel %vm2195_vm8, 4294967295, %v2793_v2  ;;  %vm2215_vm15 = vmpackc.low %vm2800_vm11, %vm2799_vm4  ;;  %vm2807_vm11 = vcmp.eq.s32.totalorder %v1570_v12, %v1818_v37  ;;  %vm2808_vm4 = vcmp.eq.s32.totalorder %v1570_v12, %v1825_v39  ;;  %vm2812_vm8 = vcmp.eq.s32.totalorder %v1572_v13, %v1703_v30 }
  0x5c   : > { %v2802_v4 = vsel %vm2215_vm15, 4294967295, %v2801_v4  ;;  %vm2229_vm9 = vmpackc.low %vm2804_vm6, %vm2803_vm12  ;;  %vm2815_vm6 = vcmp.eq.s32.totalorder %v1568_v11, %v1818_v37 }
  0x5d   : > { %vm2239_vm15 = vmpackc.low %vm2808_vm4, %vm2807_vm11 }
  0x5e   : > { %vm2249_vm12 = vmpackc.low %vm2812_vm8, %vm2811_vm1  ;;  %vm2820_vm8 = vcmp.eq.s32.totalorder %v1652_v24, %v1700_v29 }
  0x5f   : > { %v2814_v8 = vsel %vm2249_vm12, 4294967295, %v2813_v8  ;;  %vm2259_vm11 = vmpackc.low %vm2816_vm3, %vm2815_vm6  ;;  %vm2821_vm3 = vcmp.eq.s32.totalorder %v1652_v24, %v1703_v30  ;;  %vm2824_vm6 = vnez %v2691_v34  ;;  %vm2843_vm12 = vcmp.eq.s32.totalorder %v1568_v11, %v1691_v28 }
  0x60   : > { %v2818_v9 = vsel %vm2259_vm11, 4294967295, %v2817_v9  ;;  %vm2819_vm4 = vmpackc.low %vm2081_vm13, %vm2063_vm5  ;;  %1244 = vmatmul.mubr.msk.bf16.gmra.mrb[8].mxu1 %vm2145_vm2, %v1461_v18  ;;  %vm2825_vm5 = vnez %v2689_v33  ;;  %vm2827_vm2 = vnez %v2693_v36  ;;  %vm2842_vm11 = vcmp.eq.s32.totalorder %v1568_v11, %v1686_v27 }
  0x61   : > { %1196 = vmatmul.mubr.msk.bf16.gmra.mrb[8].mxu0 %vm2819_vm4, %v1461_v18  ;;  %vm2278_vm1 = vmpackc.low %vm2821_vm3, %vm2820_vm8  ;;  %1246 = vmatprep.mubr.msk.bf16.mxu1 %vm2827_vm2, %v1461_v18  ;;  %vm2828_vm4 = vcmp.eq.s32.totalorder %v1568_v11, %v1558_v7  ;;  %vm2831_vm3 = vcmp.eq.s32.totalorder %v1568_v11, %v1563_v10  ;;  %v2836_v7 = vmov 0  ;;  %v2840_v10 = vmov 0 }
  0x62   : > { %v2823_v14 = vsel %vm2278_vm1, 4294967295, %v2822_v14  ;;  %vm2826_vm13 = vmpackc.low %vm2824_vm6, %vm2825_vm5  ;;  %vm2834_vm5 = vcmp.eq.s32.totalorder %v1570_v12, %v1686_v27  ;;  %vm2839_vm1 = vcmp.eq.s32.totalorder %v1572_v13, %v1721_v32  ;;  %v2844_v34 = vmov 0 }
  0x63   : > { %1198 = vmatprep.mubr.msk.bf16.mxu0 %vm2826_vm13, %v1461_v18  ;;  %vm2296_vm8 = vmand %vm2828_vm4, %vm2751_vm14  ;;  %vm2835_vm13 = vcmp.eq.s32.totalorder %v1570_v12, %v1691_v28  ;;  %vm2838_vm4 = vcmp.eq.s32.totalorder %v1572_v13, %v1710_v31  ;;  %v2856_v28 = vmov 0  ;;  %v2860_v36 = vmov 0 }
  0x64   : > { %vm2305_vm6 = vmand %vm2831_vm3, %vm2751_vm14 }
  0x65   : > { %vm2315_vm2 = vmpackc.low %vm2835_vm13, %vm2834_vm5  ;;  %vm2846_vm13 = vcmp.eq.s32.totalorder %v1652_v24, %v1710_v31 }
  0x66   : > { %v2837_v7 = vsel %vm2315_vm2, 4294967295, %v2836_v7  ;;  %vm2325_vm3 = vmpackc.low %vm2839_vm1, %vm2838_vm4  ;;  %vm2847_vm2 = vcmp.eq.s32.totalorder %v1652_v24, %v1721_v32  ;;  %vm2850_vm4 = vcmp.eq.s32.totalorder %v1570_v12, %v1631_v20 }
  0x67   : > { %v2841_v10 = vsel %vm2325_vm3, 4294967295, %v2840_v10  ;;  %vm2335_vm5 = vmpackc.low %vm2843_vm12, %vm2842_vm11  ;;  %vm2851_vm3 = vcmp.eq.s32.totalorder %v1570_v12, %v1634_v21  ;;  %vm2854_vm11 = vcmp.eq.s32.totalorder %v1572_v13, %v1644_v22 }
  0x68   : > { %v2845_v34 = vsel %vm2335_vm5, 4294967295, %v2844_v34  ;;  %vm2345_vm1 = vmpackc.low %vm2847_vm2, %vm2846_vm13  ;;  %vm2855_vm5 = vcmp.eq.s32.totalorder %v1572_v13, %v1649_v23  ;;  %vm2858_vm13 = vcmp.eq.s32.totalorder %v1568_v11, %v1631_v20  ;;  %1248 = vmatmul.mubr.msk.bf16.gmra.mrb[12].mxu1 %vm2229_vm9, %v1461_v18  ;;  %v2865_v20 = vmov 0 }
  0x69   : > { %v2849_v35 = vsel %vm2345_vm1, 4294967295, %v2848_v35  ;;  %vm2355_vm12 = vmpackc.low %vm2851_vm3, %vm2850_vm4  ;;  %vm2859_vm1 = vcmp.eq.s32.totalorder %v1568_v11, %v1634_v21  ;;  %vm2870_vm9 = vnez %v2699_v40 }
  0x6a   : > { %vm2365_vm2 = vmpackc.low %vm2855_vm5, %vm2854_vm11  ;;  %vm2863_vm5 = vcmp.eq.s32.totalorder %v1652_v24, %v1644_v22  ;;  %1250 = vmatprep.mubr.msk.bf16.mxu1 %vm2870_vm9, %v1461_v18 }
  0x6b   : > { %v2857_v28 = vsel %vm2365_vm2, 4294967295, %v2856_v28  ;;  %vm2375_vm3 = vmpackc.low %vm2859_vm1, %vm2858_vm13  ;;  %vm2864_vm1 = vcmp.eq.s32.totalorder %v1652_v24, %v1649_v23  ;;  %vm2867_vm13 = vnez %v2687_v26 }
  0x6c   : > { %v2861_v36 = vsel %vm2375_vm3, 4294967295, %v2860_v36  ;;  %vm2862_vm4 = vmpackc.low %vm2181_vm10, %vm2163_vm0  ;;  %vm2868_vm0 = vnez %v2685_v25  ;;  %vm2872_vm3 = vcmp.eq.s32.totalorder %v1570_v12, %v1700_v29 }
  0x6d   : > { %1200 = vmatmul.mubr.msk.bf16.gmra.mrb[12].mxu0 %vm2862_vm4, %v1461_v18  ;;  %vm2394_vm11 = vmpackc.low %vm2864_vm1, %vm2863_vm5  ;;  %vm2871_vm4 = vnez %v2681_v17  ;;  %vm2873_vm1 = vcmp.eq.s32.totalorder %v1570_v12, %v1703_v30 }
  0x6e   : > { %v2866_v20 = vsel %vm2394_vm11, 4294967295, %v2865_v20  ;;  %vm2869_vm10 = vmpackc.low %vm2867_vm13, %vm2868_vm0  ;;  %vm312_vm13 = vcmp.eq.s32.totalorder %v1572_v13, %v1818_v37  ;;  %vm314_vm0 = vcmp.eq.s32.totalorder %v1572_v13, %v1825_v39 }
  0x6f   : > { %1202 = vmatprep.mubr.msk.bf16.mxu0 %vm2869_vm10, %v1461_v18  ;;  %vm372_vm5 = vmand %vm2872_vm3, %vm2871_vm4  ;;  %vm2874_vm3 = vnez %v2712_v44 }
  0x70   : > { %vm374_vm11 = vmand %vm2873_vm1, %vm2871_vm4  ;;  %1252 = vmatmul.mubr.msk.bf16.gmra.mrb[16].mxu1 %vm2874_vm3, %v1461_v18  ;;  %vm2875_vm4 = vcmp.eq.s32.totalorder %v1568_v11, %v1700_v29  ;;  %vm2880_vm3 = vnez %v2746_v55 }
  0x71   : > { %vm1203_vm10 = vmpackc.low %vm2305_vm6, %vm2296_vm8  ;;  %vm2876_vm8 = vcmp.eq.s32.totalorder %v1568_v11, %v1703_v30 }
  0x72   : > { %vm1205_vm9 = vmpackc.low %vm374_vm11, %vm372_vm5  ;;  %vm311_vm11 = vcmp.eq.s32.totalorder %v1652_v24, %v1818_v37  ;;  %vm313_vm5 = vcmp.eq.s32.totalorder %v1652_v24, %v1825_v39 }
  0x73   : > { %vm1253_vm2 = vmpackc.low %vm314_vm0, %vm312_vm13 }
  0x74   : > { %vm371_vm1 = vmand %vm2875_vm4, %vm2751_vm14  ;;  %1254 = vmatprep.mubr.msk.bf16.mxu1 %vm1253_vm2, %v1461_v18  ;;  %vm2877_vm2 = vnez %v2738_v53  ;;  %vm2881_vm4 = vcmp.eq.s32.totalorder %v1568_v11, %v1710_v31 }
  0x75   : > { %1204 = vmatmul.mubr.msk.bf16.gmra.mrb[16].mxu0 %vm1203_vm10, %v1461_v18  ;;  %vm373_vm6 = vmand %vm2876_vm8, %vm2751_vm14  ;;  %vm2878_vm10 = vnez %v2736_v52  ;;  %vm2882_vm8 = vcmp.eq.s32.totalorder %v1568_v11, %v1721_v32 }
  0x76   : > { %1206 = vmatprep.mubr.msk.bf16.mxu0 %vm1205_vm9, %v1461_v18  ;;  %vm1207_vm13 = vmpackc.low %vm373_vm6, %vm371_vm1 }
  0x77   : > { %vm1255_vm0 = vmpackc.low %vm313_vm5, %vm311_vm11  ;;  %vm2883_vm5 = vnez %v2765_v59 }
  0x78   : > { %1256 = vmatmul.mubr.msk.bf16.gmra.mrb[20].mxu1 %vm1255_vm0, %v1461_v18  ;;  %vm2879_vm9 = vmpackc.low %vm2877_vm2, %vm2878_vm10  ;;  %vm2886_vm2 = vnez %v2776_v62  ;;  %vm2887_vm10 = vcmp.eq.s32.totalorder %v1568_v11, %v1644_v22 }
  0x79   : > { %1258 = vmatprep.mubr.msk.bf16.mxu1 %vm2880_vm3, %v1461_v18  ;;  %vm375_vm1 = vmand %vm2881_vm4, %vm2751_vm14  ;;  %vm2888_vm3 = vcmp.eq.s32.totalorder %v1568_v11, %v1649_v23 }
  0x7a   : > { %vm377_vm6 = vmand %vm2882_vm8, %vm2751_vm14  ;;  %vm2890_vm8 = vnez %v2679_v16 }
  0x7b   : > { %vm1211_vm11 = vmpackc.low %vm377_vm6, %vm375_vm1  ;;  %vm2891_vm6 = vnez %v2798_v3 }
  0x7c   : > { %vm381_vm4 = vmand %vm2888_vm3, %vm2751_vm14  ;;  %vm2901_vm3 = vnez %v2857_v28 }
  0x7d   : > { %1208 = vmatmul.mubr.msk.bf16.gmra.mrb[20].mxu0 %vm1207_vm13, %v1461_v18  ;;  %vm2884_vm13 = vnez %v2769_v60 }
  0x7e   : > { %1210 = vmatprep.mubr.msk.bf16.mxu0 %vm2879_vm9, %v1461_v18  ;;  %vm2885_vm0 = vmpackc.low %vm2113_vm7, %vm2884_vm13  ;;  %vm2889_vm7 = vnez %v2794_v2  ;;  %vm2895_vm13 = vnez %v2818_v9 }
  0x7f   : > { %vm379_vm9 = vmand %vm2887_vm10, %vm2751_vm14  ;;  %vm2893_vm14 = vnez %v2802_v4  ;;  %vm2898_vm10 = vnez %v2841_v10 }
  0x80   : > { %1260 = vmatmul.mubr.msk.bf16.gmra.mrb[24].mxu1 %vm2883_vm5, %v1461_v18  ;;  %vm1215_vm1 = vmpackc.low %vm381_vm4, %vm379_vm9  ;;  %vm2894_vm5 = vnez %v2814_v8  ;;  %vm2900_vm9 = vnez %v2849_v35  ;;  %vm2902_vm4 = vnez %v2861_v36 }
  0x81   : > { %1262 = vmatprep.mubr.msk.bf16.mxu1 %vm2886_vm2, %v1461_v18  ;;  %vm2897_vm2 = vnez %v2837_v7 }
  0x85   : > { %1212 = vmatmul.mubr.msk.bf16.gmra.mrb[24].mxu0 %vm1211_vm11, %v1461_v18  ;;  %vm2892_vm11 = vnez %v2683_v19 }
  0x86   : > { %1214 = vmatprep.mubr.msk.bf16.mxu0 %vm2885_vm0, %v1461_v18  ;;  %vm2896_vm0 = vnez %v2823_v14 }
  0x88   : > { %1264 = vmatmul.mubr.msk.bf16.gmra.mrb[28].mxu1 %vm2889_vm7, %v1461_v18 }
  0x89   : > { %1266 = vmatprep.mubr.msk.bf16.mxu1 %vm2891_vm6, %v1461_v18 }
  0x8d   : > { %1216 = vmatmul.mubr.msk.bf16.gmra.mrb[28].mxu0 %vm1215_vm1, %v1461_v18  ;;  %vm2903_vm1 = vnez %v2866_v20 }
  0x8e   : > { %1218 = vmatprep.mubr.msk.bf16.mxu0 %vm2890_vm8, %v1461_v18 }
  0x90   : > { %1268 = vmatmul.mubr.msk.bf16.gmra.mrb[32].mxu1 %vm2893_vm14, %v1461_v18 }
  0x91   : > { %1270 = vmatprep.mubr.msk.bf16.mxu1 %vm2894_vm5, %v1461_v18 }
  0x95   : > { %1220 = vmatmul.mubr.msk.bf16.gmra.mrb[32].mxu0 %vm2892_vm11, %v1461_v18 }
  0x96   : > { %1222 = vmatprep.mubr.msk.bf16.mxu0 %vm2239_vm15, %v1461_v18  ;;  %vm2899_vm15 = vnez %v2845_v34 }
  0x98   : > { %1272 = vmatmul.mubr.msk.bf16.gmra.mrb[36].mxu1 %vm2896_vm0, %v1461_v18 }
  0x99   : > { %1274 = vmatprep.mubr.msk.bf16.mxu1 %vm2898_vm10, %v1461_v18 }
  0x9d   : > { %1224 = vmatmul.mubr.msk.bf16.gmra.mrb[36].mxu0 %vm2895_vm13, %v1461_v18 }
  0x9e   : > { %1226 = vmatprep.mubr.msk.bf16.mxu0 %vm2897_vm2, %v1461_v18 }
  0xa0   : > { %1276 = vmatmul.mubr.msk.bf16.gmra.mrb[40].mxu1 %vm2900_vm9, %v1461_v18 }
  0xa1   : > { %1278 = vmatprep.mubr.msk.bf16.mxu1 %vm2901_vm3, %v1461_v18 }
  0xa5   : > { %1228 = vmatmul.mubr.msk.bf16.gmra.mrb[40].mxu0 %vm2899_vm15, %v1461_v18 }
  0xa6   : > { %1230 = vmatprep.mubr.msk.bf16.mxu0 %vm2355_vm12, %v1461_v18 }
  0xa8   : > { %1280 = vmatmul.mubr.msk.bf16.gmra.mrb[44].mxu1 %vm2903_vm1, %v1461_v18 }
  0xad   : > { %1232 = vmatmul.mubr.msk.bf16.gmra.mrb[44].mxu0 %vm2902_vm4, %v1461_v18 }
 0x122   : > { %v705_v11 = vpop.f32.mrb[0].mxu0 }
 0x123   : > { %v801_v12 = vpop.f32.mrb[0].mxu1  ;;  %v707_v13 = vpop.f32.mrb[1].mxu0  ;;  %944 = vst [vmem:[%s2544_s4] sm:$0xff] %v705_v11 }
 0x124   : > { %v803_v16 = vpop.f32.mrb[1].mxu1  ;;  %v708_v17 = vpop.f32.mrb[2].mxu0  ;;  %968 = vst [vmem:[%s2544_s4 + $0xc0] sm:$0xff] %v801_v12 }
 0x125   : > { %v804_v19 = vpop.f32.mrb[2].mxu1  ;;  %v710_v18 = vpop.f32.mrb[3].mxu0  ;;  %945 = vst [vmem:[%s2544_s4 + $0x8] sm:$0xff] %v708_v17 }
 0x126   : > { %v806_v21 = vpop.f32.mrb[3].mxu1  ;;  %969 = vst [vmem:[%s2544_s4 + $0xc8] sm:$0xff] %v804_v19 }
 0x12a   : > { %v713_v22 = vpop.f32.mrb[4].mxu0 }
 0x12b   : > { %v809_v23 = vpop.f32.mrb[4].mxu1  ;;  %v715_v24 = vpop.f32.mrb[5].mxu0  ;;  %946 = vst [vmem:[%s2544_s4 + $0x10] sm:$0xff] %v713_v22 }
 0x12c   : > { %v811_v25 = vpop.f32.mrb[5].mxu1  ;;  %v716_v26 = vpop.f32.mrb[6].mxu0  ;;  %970 = vst [vmem:[%s2544_s4 + $0xd0] sm:$0xff] %v809_v23 }
 0x12d   : > { %v812_v29 = vpop.f32.mrb[6].mxu1  ;;  %v718_v30 = vpop.f32.mrb[7].mxu0  ;;  %947 = vst [vmem:[%s2544_s4 + $0x18] sm:$0xff] %v716_v26 }
 0x12e   : > { %v814_v31 = vpop.f32.mrb[7].mxu1  ;;  %971 = vst [vmem:[%s2544_s4 + $0xd8] sm:$0xff] %v812_v29 }
 0x133   : > { %v817_v37 = vpop.f32.mrb[8].mxu1 }
 0x134   : > { %v721_v32 = vpop.f32.mrb[8].mxu0  ;;  %v819_v39 = vpop.f32.mrb[9].mxu1  ;;  %972 = vst [vmem:[%s2544_s4 + $0xe0] sm:$0xff] %v817_v37 }
 0x135   : > { %v723_v38 = vpop.f32.mrb[9].mxu0  ;;  %v820_v41 = vpop.f32.mrb[10].mxu1  ;;  %948 = vst [vmem:[%s2544_s4 + $0x20] sm:$0xff] %v721_v32 }
 0x136   : > { %v724_v40 = vpop.f32.mrb[10].mxu0  ;;  %v822_v43 = vpop.f32.mrb[11].mxu1  ;;  %973 = vst [vmem:[%s2544_s4 + $0xe8] sm:$0xff] %v820_v41 }
 0x137   : > { %v726_v42 = vpop.f32.mrb[11].mxu0  ;;  %949 = vst [vmem:[%s2544_s4 + $0x28] sm:$0xff] %v724_v40 }
 0x13b   : > { %v825_v45 = vpop.f32.mrb[12].mxu1 }
 0x13c   : > { %v827_v47 = vpop.f32.mrb[13].mxu1  ;;  %974 = vst [vmem:[%s2544_s4 + $0xf0] sm:$0xff] %v825_v45 }
 0x13d   : > { %v828_v49 = vpop.f32.mrb[14].mxu1 }
 0x13e   : > { %v830_v51 = vpop.f32.mrb[15].mxu1  ;;  %975 = vst [vmem:[%s2544_s4 + $0xf8] sm:$0xff] %v828_v49 }
 0x140   : > { %v729_v44 = vpop.f32.mrb[12].mxu0 }
 0x141   : > { %v731_v46 = vpop.f32.mrb[13].mxu0  ;;  %950 = vst [vmem:[%s2544_s4 + $0x30] sm:$0xff] %v729_v44 }
 0x142   : > { %v732_v48 = vpop.f32.mrb[14].mxu0 }
 0x143   : > { %v734_v50 = vpop.f32.mrb[15].mxu0  ;;  %951 = vst [vmem:[%s2544_s4 + $0x38] sm:$0xff] %v732_v48  ;;  %v833_v53 = vpop.f32.mrb[16].mxu1 }
 0x144   : > { %v835_v55 = vpop.f32.mrb[17].mxu1  ;;  %976 = vst [vmem:[%s2544_s4 + $0x100] sm:$0xff] %v833_v53 }
 0x145   : > { %v836_v57 = vpop.f32.mrb[18].mxu1 }
 0x146   : > { %v838_v59 = vpop.f32.mrb[19].mxu1  ;;  %977 = vst [vmem:[%s2544_s4 + $0x108] sm:$0xff] %v836_v57 }
 0x148   : > { %v737_v52 = vpop.f32.mrb[16].mxu0 }
 0x149   : > { %v739_v54 = vpop.f32.mrb[17].mxu0  ;;  %952 = vst [vmem:[%s2544_s4 + $0x40] sm:$0xff] %v737_v52 }
 0x14a   : > { %v740_v56 = vpop.f32.mrb[18].mxu0 }
 0x14b   : > { %v742_v58 = vpop.f32.mrb[19].mxu0  ;;  %953 = vst [vmem:[%s2544_s4 + $0x48] sm:$0xff] %v740_v56  ;;  %v841_v61 = vpop.f32.mrb[20].mxu1 }
 0x14c   : > { %v843_v63 = vpop.f32.mrb[21].mxu1  ;;  %978 = vst [vmem:[%s2544_s4 + $0x110] sm:$0xff] %v841_v61 }
 0x14d   : > { %v844_v1 = vpop.f32.mrb[22].mxu1 }
 0x14e   : > { %v846_v3 = vpop.f32.mrb[23].mxu1  ;;  %979 = vst [vmem:[%s2544_s4 + $0x118] sm:$0xff] %v844_v1 }
 0x150   : > { %v745_v60 = vpop.f32.mrb[20].mxu0 }
 0x151   : > { %v747_v62 = vpop.f32.mrb[21].mxu0  ;;  %954 = vst [vmem:[%s2544_s4 + $0x50] sm:$0xff] %v745_v60 }
 0x152   : > { %v748_v0 = vpop.f32.mrb[22].mxu0 }
 0x153   : > { %v750_v2 = vpop.f32.mrb[23].mxu0  ;;  %955 = vst [vmem:[%s2544_s4 + $0x58] sm:$0xff] %v748_v0  ;;  %v849_v5 = vpop.f32.mrb[24].mxu1 }
 0x154   : > { %v851_v8 = vpop.f32.mrb[25].mxu1  ;;  %980 = vst [vmem:[%s2544_s4 + $0x120] sm:$0xff] %v849_v5 }
 0x155   : > { %v852_v14 = vpop.f32.mrb[26].mxu1 }
 0x156   : > { %v854_v33 = vpop.f32.mrb[27].mxu1  ;;  %981 = vst [vmem:[%s2544_s4 + $0x128] sm:$0xff] %v852_v14 }
 0x158   : > { %v753_v4 = vpop.f32.mrb[24].mxu0 }
 0x159   : > { %v755_v6 = vpop.f32.mrb[25].mxu0  ;;  %956 = vst [vmem:[%s2544_s4 + $0x60] sm:$0xff] %v753_v4 }
 0x15a   : > { %v756_v9 = vpop.f32.mrb[26].mxu0 }
 0x15b   : > { %v758_v15 = vpop.f32.mrb[27].mxu0  ;;  %957 = vst [vmem:[%s2544_s4 + $0x68] sm:$0xff] %v756_v9  ;;  %v857_v10 = vpop.f32.mrb[28].mxu1 }
 0x15c   : > { %v859_v35 = vpop.f32.mrb[29].mxu1  ;;  %982 = vst [vmem:[%s2544_s4 + $0x130] sm:$0xff] %v857_v10 }
 0x15d   : > { %v860_v28 = vpop.f32.mrb[30].mxu1 }
 0x15e   : > { %v862_v20 = vpop.f32.mrb[31].mxu1  ;;  %983 = vst [vmem:[%s2544_s4 + $0x138] sm:$0xff] %v860_v28 }
 0x160   : > { %v761_v7 = vpop.f32.mrb[28].mxu0 }
 0x161   : > { %v763_v34 = vpop.f32.mrb[29].mxu0  ;;  %958 = vst [vmem:[%s2544_s4 + $0x70] sm:$0xff] %v761_v7 }
 0x162   : > { %v764_v27 = vpop.f32.mrb[30].mxu0 }
 0x163   : > { %v766_v36 = vpop.f32.mrb[31].mxu0  ;;  %959 = vst [vmem:[%s2544_s4 + $0x78] sm:$0xff] %v764_v27  ;;  %v865_v12 = vpop.f32.mrb[32].mxu1 }
 0x164   : > { %v867_v16 = vpop.f32.mrb[33].mxu1  ;;  %984 = vst [vmem:[%s2544_s4 + $0x140] sm:$0xff] %v865_v12 }
 0x165   : > { %v868_v19 = vpop.f32.mrb[34].mxu1 }
 0x166   : > { %v870_v21 = vpop.f32.mrb[35].mxu1  ;;  %985 = vst [vmem:[%s2544_s4 + $0x148] sm:$0xff] %v868_v19 }
 0x168   : > { %v769_v11 = vpop.f32.mrb[32].mxu0 }
 0x169   : > { %v771_v13 = vpop.f32.mrb[33].mxu0  ;;  %960 = vst [vmem:[%s2544_s4 + $0x80] sm:$0xff] %v769_v11 }
 0x16a   : > { %v772_v17 = vpop.f32.mrb[34].mxu0 }
 0x16b   : > { %v774_v18 = vpop.f32.mrb[35].mxu0  ;;  %961 = vst [vmem:[%s2544_s4 + $0x88] sm:$0xff] %v772_v17  ;;  %v873_v23 = vpop.f32.mrb[36].mxu1 }
 0x16c   : > { %v875_v25 = vpop.f32.mrb[37].mxu1  ;;  %986 = vst [vmem:[%s2544_s4 + $0x150] sm:$0xff] %v873_v23 }
 0x16d   : > { %v876_v29 = vpop.f32.mrb[38].mxu1 }
 0x16e   : > { %v878_v31 = vpop.f32.mrb[39].mxu1  ;;  %987 = vst [vmem:[%s2544_s4 + $0x158] sm:$0xff] %v876_v29 }
 0x170   : > { %v777_v22 = vpop.f32.mrb[36].mxu0 }
 0x171   : > { %v779_v24 = vpop.f32.mrb[37].mxu0  ;;  %962 = vst [vmem:[%s2544_s4 + $0x90] sm:$0xff] %v777_v22 }
 0x172   : > { %v780_v26 = vpop.f32.mrb[38].mxu0 }
 0x173   : > { %v782_v30 = vpop.f32.mrb[39].mxu0  ;;  %963 = vst [vmem:[%s2544_s4 + $0x98] sm:$0xff] %v780_v26  ;;  %v881_v37 = vpop.f32.mrb[40].mxu1 }
 0x174   : > { %v883_v39 = vpop.f32.mrb[41].mxu1  ;;  %988 = vst [vmem:[%s2544_s4 + $0x160] sm:$0xff] %v881_v37 }
 0x175   : > { %v884_v41 = vpop.f32.mrb[42].mxu1 }
 0x176   : > { %v886_v43 = vpop.f32.mrb[43].mxu1  ;;  %989 = vst [vmem:[%s2544_s4 + $0x168] sm:$0xff] %v884_v41 }
 0x178   : > { %v785_v32 = vpop.f32.mrb[40].mxu0 }
 0x179   : > { %v787_v38 = vpop.f32.mrb[41].mxu0  ;;  %964 = vst [vmem:[%s2544_s4 + $0xa0] sm:$0xff] %v785_v32 }
 0x17a   : > { %v788_v40 = vpop.f32.mrb[42].mxu0 }
 0x17b   : > { %v790_v42 = vpop.f32.mrb[43].mxu0  ;;  %965 = vst [vmem:[%s2544_s4 + $0xa8] sm:$0xff] %v788_v40  ;;  %v889_v45 = vpop.f32.mrb[44].mxu1 }
 0x17c   : > { %v891_v47 = vpop.f32.mrb[45].mxu1  ;;  %990 = vst [vmem:[%s2544_s4 + $0x170] sm:$0xff] %v889_v45 }
 0x17d   : > { %v892_v49 = vpop.f32.mrb[46].mxu1 }
 0x17e   : > { %v894_v51 = vpop.f32.mrb[47].mxu1  ;;  %991 = vst [vmem:[%s2544_s4 + $0x178] sm:$0xff] %v892_v49 }
 0x180   : > { %v793_v44 = vpop.f32.mrb[44].mxu0 }
 0x181   : > { %v795_v46 = vpop.f32.mrb[45].mxu0  ;;  %966 = vst [vmem:[%s2544_s4 + $0xb0] sm:$0xff] %v793_v44 }
 0x182   : > { %v796_v48 = vpop.f32.mrb[46].mxu0 }
 0x183   : > { %v798_v50 = vpop.f32.mrb[47].mxu0  ;;  %967 = vst [vmem:[%s2544_s4 + $0xb8] sm:$0xff] %v796_v48 }
 0x184   : > { %1392 = shalt.err (!%p1389_p5)
}
 0x185   : > { %s1393_s24 = scalar_lea.hbm %s2595_s15, 6144  ;;  %s1397_s27 = scalar_lea.hbm %s2653_s2, 12288 }
 0x186   : > { %p1394_p6 = scmp.ne.s32.totalorder %s2595_s15, %s1393_s24  ;;  %p1398_p10 = scmp.lt.u32.totalorder %s2595_s15, %s2653_s2 }
 0x187   : > { %p1399_p11 = scmp.lt.u32.totalorder %s1397_s27, %s1393_s24  ;;  %p1401_p13 = scmp.lt.u32.totalorder %s1393_s24, %s2595_s15 }
 0x188   : > { %p1395_p7 = pnand %p1394_p6, %p1520_p4 }
 0x189   : > { %p1400_p12 = por %p1399_p11, %p1398_p10 }
 0x18a   : > { %p1396_p9 = pneg %p1395_p7 }
 0x18b   : > { %p1402_p0 = por %p1401_p13, %p1400_p12 }
 0x18d   : > { %p1403_p1 = pnand %p1402_p0, %p1396_p9 }
 0x18f   : > { %1406 = shalt.err (!%p1403_p1)
}
 0x190   : > { %s1463_s30 = smov 128   ;;  %s1464_s3 = smov 8  }
 0x191   : > { %1318 = dma.vmem_to_hbm [thread:$0]  (%p1520_p4), %s2597_s6, 6144, %s2595_s15, %s2605_s12, %s1463_s30, %s1463_s30, %s1464_s3  }
 0x192 PF: > { %p1324_p2 = scmp.ge.s32.totalorder %s1457_s14, 2  ;;  %s1021_s4 = sand.u32 1, %s1437_s9  }
 0x193   : > { %s1022_s5 = scalar_lea.sflag [#allocation3], %s1021_s4 }
 0x194   : > { %p1321_p3 = pnand %p1324_p2, %p1527_p8 }
 0x196   : > { %1432 = dma.done.wait (!%p1321_p3), %s1022_s5, 6144  }
 0x197   : > { %1434 = vsyncadd (!%p1321_p3), %s1022_s5, 4294961152  ;;  %s15_s14 = sadd.s32 1, %s1457_s14   ;;  %s2904_s9 = smov %s1441_s10 }
 0x198   : > { %p12_p5 = scmp.ge.s32.totalorder %s15_s14, 4   ;;  %s2905_s10 = smov %s1445_s11 }
 0x199   : > { %s2906_s11 = smov %s1533_s22  ;;  %s2907_s12 = smov %s1453_s13 }
 0x19a   : > { %s2908_s13 = smov %s2910_s17  ;;  %14 = sbr.rel (!%p12_p5) target bundleno = 4 (0x4), region = 70 }
 0x1a1   :  { %1027 = vsyncpa [#allocation3], 1 }
 0x1a2   :  { %1029 = vsyncpa [#allocation3 + $0x1], 1 }

</bundles_post_ra>
